<compile_context>
chip_gen: v6e
topology: v6e:2x2x1
jax: 0.10.0
libtpu: 0.0.40
codegen_flags: <defaults>
</compile_context>

<pallas_src>
import jax
import jax.numpy as jnp
from jax.experimental import pallas as pl
from jax.experimental.pallas import tpu as pltpu

IN_DIM = 28 * 28   # 784
HID_DIM = 450
OUT_DIM = 47

HID_PAD = 512      # 450 padded to a multiple of 128 (aligned MXU K/N)
OUT_PAD = 128      # 47 padded to a full lane width (dense output stores)

DEFAULT_BATCH_TILE = 2048


def _round_up(x, m):
    return pl.cdiv(x, m) * m


def _mlp_kernel(x_ref, w1_ref, b1_ref, w2_ref, b2_ref, o_ref):
    # x: (tb, 784) f32 streamed from HBM; weights bf16 VMEM-resident.
    x = x_ref[...].astype(jnp.bfloat16)                               # in-kernel cast
    h = jnp.dot(x, w1_ref[...], preferred_element_type=jnp.float32)  # (tb, 512) f32
    h = jnp.maximum(h + b1_ref[...], 0.0)                            # bias + ReLU in f32
    y = jnp.dot(h.astype(jnp.bfloat16), w2_ref[...],
                preferred_element_type=jnp.float32)                  # (tb, 128) f32
    o_ref[...] = (y + b2_ref[...]).astype(o_ref.dtype)


def prepare_params(w1, b1, w2, b2):
    """One-time pad + bf16 cast of the parameters (hoisted out of the forward
    path).  w1: (784, 450), b1: (450,), w2: (450, 47), b2: (47,)
    (weights pre-transposed to (in, out))."""
    w1p = jnp.zeros((IN_DIM, HID_PAD), jnp.bfloat16).at[:, :HID_DIM].set(
        w1.astype(jnp.bfloat16))
    b1p = jnp.zeros((1, HID_PAD), jnp.float32).at[:, :HID_DIM].set(
        b1.reshape(1, HID_DIM).astype(jnp.float32))
    w2p = jnp.zeros((HID_PAD, OUT_PAD), jnp.bfloat16).at[:HID_DIM, :OUT_DIM].set(
        w2.astype(jnp.bfloat16))
    b2p = jnp.zeros((1, OUT_PAD), jnp.float32).at[:, :OUT_DIM].set(
        b2.reshape(1, OUT_DIM).astype(jnp.float32))
    return w1p, b1p, w2p, b2p


def _choose_batch_tile(batch, batch_tile):
    if batch < 16:
        # Single block covering the whole batch (block dim == full array dim
        # is always layout-legal); zero padding waste.
        return batch
    tb = min(batch_tile, _round_up(batch, 8))
    # Guarantee >= 2 balanced tiles so ("parallel",) can split across v7x's
    # two TensorCores, and so the masked edge tile never wastes > ~half a tile.
    half = _round_up(pl.cdiv(batch, 2), 8)
    return max(8, min(tb, half))


def _vmem_limit_bytes(tb):
    stream = 2 * (tb * IN_DIM * 4 + tb * OUT_PAD * 4)          # double-buffered in/out
    weights = 2 * 2 * (IN_DIM * HID_PAD + HID_PAD * OUT_PAD)   # bf16, double-buffered
    interm = tb * HID_PAD * 6                                  # f32 h + bf16 copy
    est = int(1.3 * (stream + weights + interm)) + (2 << 20)
    return max(32 << 20, min(est, 96 << 20))


def emnist_net2_forward(img, params, *, batch_tile=DEFAULT_BATCH_TILE):
    """img: (B, 1, 28, 28) or (B, 784) float32.  params = prepare_params(...).
    Returns logits (B, 47) float32, matching relu(x @ w1 + b1) @ w2 + b2."""
    w1p, b1p, w2p, b2p = params
    x = img.reshape(-1, IN_DIM).astype(jnp.float32)   # no pad / cast copy in wrapper
    batch = x.shape[0]

    tb = _choose_batch_tile(batch, batch_tile)
    grid = (pl.cdiv(batch, tb),)

    out = pl.pallas_call(
        _mlp_kernel,
        out_shape=jax.ShapeDtypeStruct((batch, OUT_PAD), jnp.float32),
        grid=grid,
        in_specs=[
            pl.BlockSpec((tb, IN_DIM), lambda i: (i, 0)),        # activations: streamed
            pl.BlockSpec((IN_DIM, HID_PAD), lambda i: (0, 0)),   # w1: resident
            pl.BlockSpec((1, HID_PAD), lambda i: (0, 0)),        # b1: resident
            pl.BlockSpec((HID_PAD, OUT_PAD), lambda i: (0, 0)),  # w2: resident
            pl.BlockSpec((1, OUT_PAD), lambda i: (0, 0)),        # b2: resident
        ],
        out_specs=pl.BlockSpec((tb, OUT_PAD), lambda i: (i, 0)),
        compiler_params=pltpu.CompilerParams(
            dimension_semantics=("parallel",),
            vmem_limit_bytes=_vmem_limit_bytes(tb),
        ),
    )(x, w1p, b1p, w2p, b2p)

    # Slice away only the lane-padding columns (rows are exact: no batch pad).
    return out[:, :OUT_DIM]


def init_params(key):
    """Deterministic init mimicking nn.Linear's uniform(-1/sqrt(fan_in), ...).
    Weights stored pre-transposed as (in, out)."""
    k1, k2, k3, k4 = jax.random.split(key, 4)
    bound1 = 1.0 / jnp.sqrt(jnp.float32(IN_DIM))
    bound2 = 1.0 / jnp.sqrt(jnp.float32(HID_DIM))
    w1 = jax.random.uniform(k1, (IN_DIM, HID_DIM), jnp.float32, -bound1, bound1)
    b1 = jax.random.uniform(k2, (HID_DIM,), jnp.float32, -bound1, bound1)
    w2 = jax.random.uniform(k3, (HID_DIM, OUT_DIM), jnp.float32, -bound2, bound2)
    b2 = jax.random.uniform(k4, (OUT_DIM,), jnp.float32, -bound2, bound2)
    return w1, b1, w2, b2


def _reference(x, w1, b1, w2, b2):
    # Plain-JAX reference mirroring the kernel's bf16 rounding of inputs and
    # weights (f32 accumulation in both cases).
    # Note: bf16 rounding deviates from a strict f32 PyTorch forward by ~1e-2
    # relative; acceptable for inference.
    xb = x.astype(jnp.bfloat16).astype(jnp.float32)
    w1b = w1.astype(jnp.bfloat16).astype(jnp.float32)
    w2b = w2.astype(jnp.bfloat16).astype(jnp.float32)
    h = jnp.maximum(xb @ w1b + b1[None, :], 0.0)
    hb = h.astype(jnp.bfloat16).astype(jnp.float32)
    return hb @ w2b + b2[None, :]


if __name__ == "__main__":
    key = jax.random.PRNGKey(0)
    k_img, k_img2, k_params = jax.random.split(key, 3)

    w1, b1, w2, b2 = init_params(k_params)
    params = prepare_params(w1, b1, w2, b2)   # one-time parameter prep

    # Small batch: single exact-size block.
    B = 2
    img = jax.random.normal(k_img, (B, 1, 28, 28), jnp.float32)
    logits = emnist_net2_forward(img, params)
    jax.block_until_ready(logits)
    assert logits.shape == (B, OUT_DIM)
    ref = _reference(img.reshape(-1, IN_DIM), w1, b1, w2, b2)
    assert jnp.allclose(logits, ref, atol=5e-3, rtol=5e-3), (
        float(jnp.max(jnp.abs(logits - ref))))

    # Larger, non-multiple batch: exercises the multi-tile cdiv grid with a
    # masked partial edge block (no wrapper-side padding copy).
    B2 = 50
    img2 = jax.random.normal(k_img2, (B2, 1, 28, 28), jnp.float32)
    logits2 = emnist_net2_forward(img2, params)
    jax.block_until_ready(logits2)
    assert logits2.shape == (B2, OUT_DIM)
    ref2 = _reference(img2.reshape(-1, IN_DIM), w1, b1, w2, b2)
    assert jnp.allclose(logits2, ref2, atol=5e-3, rtol=5e-3), (
        float(jnp.max(jnp.abs(logits2 - ref2))))

    print("KERNEL_OK")
</pallas_src>

<mosaic_0001>
module attributes {stable_mosaic.version = 11 : i64} {
  func.func @_mlp_kernel(%arg0: i32, %arg1: memref<2x784xf32, #tpu.memory_space<vmem>>, %arg2: memref<784x512xbf16, #tpu.memory_space<vmem>>, %arg3: memref<1x512xf32, #tpu.memory_space<vmem>>, %arg4: memref<512x128xbf16, #tpu.memory_space<vmem>>, %arg5: memref<1x128xf32, #tpu.memory_space<vmem>>, %arg6: memref<2x128xf32, #tpu.memory_space<vmem>>) attributes {dimension_semantics = [#tpu.dimension_semantics<parallel>], iteration_bounds = array<i64: 1>, scalar_prefetch = 0 : i64, scratch_operands = 0 : i64, tpu.core_type = #tpu.core_type<tc>, window_params = [{transform_indices = @transform_0, window_bounds = array<i64: 2, 784>}, {pipeline_mode = #tpu.pipeline_mode<synchronous>, transform_indices = @transform_1, window_bounds = array<i64: 784, 512>}, {pipeline_mode = #tpu.pipeline_mode<synchronous>, transform_indices = @transform_2, window_bounds = array<i64: 1, 512>}, {pipeline_mode = #tpu.pipeline_mode<synchronous>, transform_indices = @transform_3, window_bounds = array<i64: 512, 128>}, {pipeline_mode = #tpu.pipeline_mode<synchronous>, transform_indices = @transform_4, window_bounds = array<i64: 1, 128>}, {transform_indices = @transform_5, window_bounds = array<i64: 2, 128>}]} {
    %c0 = arith.constant 0 : index
    %c0_0 = arith.constant 0 : index
    %0 = vector.load %arg1[%c0, %c0_0] : memref<2x784xf32, #tpu.memory_space<vmem>>, vector<2x784xf32>
    %1 = arith.truncf %0 : vector<2x784xf32> to vector<2x784xbf16>
    %c0_1 = arith.constant 0 : index
    %c0_2 = arith.constant 0 : index
    %2 = vector.load %arg2[%c0_1, %c0_2] : memref<784x512xbf16, #tpu.memory_space<vmem>>, vector<784x512xbf16>
    %cst = arith.constant dense<0.000000e+00> : vector<2x512xf32>
    %3 = tpu.matmul %1, %2, %cst {dimension_numbers = #tpu.dot_dimension_numbers<[1], [0], [0], [1], [0, 0, 1, 1], [], []>} : vector<2x784xbf16>, vector<784x512xbf16>, vector<2x512xf32> -> vector<2x512xf32>
    %c0_3 = arith.constant 0 : index
    %c0_4 = arith.constant 0 : index
    %4 = vector.load %arg3[%c0_3, %c0_4] : memref<1x512xf32, #tpu.memory_space<vmem>>, vector<1x512xf32>
    %5 = vector.broadcast %4 : vector<1x512xf32> to vector<2x512xf32>
    %6 = arith.addf %3, %5 : vector<2x512xf32>
    %cst_5 = arith.constant 0.000000e+00 : f32
    %7 = vector.broadcast %cst_5 : f32 to vector<2x512xf32>
    %8 = arith.maximumf %6, %7 : vector<2x512xf32>
    %9 = arith.truncf %8 : vector<2x512xf32> to vector<2x512xbf16>
    %c0_6 = arith.constant 0 : index
    %c0_7 = arith.constant 0 : index
    %10 = vector.load %arg4[%c0_6, %c0_7] : memref<512x128xbf16, #tpu.memory_space<vmem>>, vector<512x128xbf16>
    %cst_8 = arith.constant dense<0.000000e+00> : vector<2x128xf32>
    %11 = tpu.matmul %9, %10, %cst_8 {dimension_numbers = #tpu.dot_dimension_numbers<[1], [0], [0], [1], [0, 0, 1, 1], [], []>} : vector<2x512xbf16>, vector<512x128xbf16>, vector<2x128xf32> -> vector<2x128xf32>
    %c0_9 = arith.constant 0 : index
    %c0_10 = arith.constant 0 : index
    %12 = vector.load %arg5[%c0_9, %c0_10] : memref<1x128xf32, #tpu.memory_space<vmem>>, vector<1x128xf32>
    %13 = vector.broadcast %12 : vector<1x128xf32> to vector<2x128xf32>
    %14 = arith.addf %11, %13 : vector<2x128xf32>
    %c0_11 = arith.constant 0 : index
    %c0_12 = arith.constant 0 : index
    %15 = vector.load %arg6[%c0_11, %c0_12] : memref<2x128xf32, #tpu.memory_space<vmem>>, vector<2x128xf32>
    tpu.vector_store %arg6[%c0_11, %c0_12], %14 {strides = array<i32>} : memref<2x128xf32, #tpu.memory_space<vmem>>, vector<2x128xf32>,
    return
  }
  func.func @transform_0(%arg0: i32) -> (i32, i32) {
    %c0_i32 = arith.constant 0 : i32
    %c0_i32_0 = arith.constant 0 : i32
    return %arg0, %c0_i32 : i32, i32
  }
  func.func @transform_1(%arg0: i32) -> (i32, i32) {
    %c0_i32 = arith.constant 0 : i32
    %c0_i32_0 = arith.constant 0 : i32
    %c0_i32_1 = arith.constant 0 : i32
    return %c0_i32, %c0_i32_0 : i32, i32
  }
  func.func @transform_2(%arg0: i32) -> (i32, i32) {
    %c0_i32 = arith.constant 0 : i32
    %c0_i32_0 = arith.constant 0 : i32
    %c0_i32_1 = arith.constant 0 : i32
    return %c0_i32, %c0_i32_0 : i32, i32
  }
  func.func @transform_3(%arg0: i32) -> (i32, i32) {
    %c0_i32 = arith.constant 0 : i32
    %c0_i32_0 = arith.constant 0 : i32
    %c0_i32_1 = arith.constant 0 : i32
    return %c0_i32, %c0_i32_0 : i32, i32
  }
  func.func @transform_4(%arg0: i32) -> (i32, i32) {
    %c0_i32 = arith.constant 0 : i32
    %c0_i32_0 = arith.constant 0 : i32
    %c0_i32_1 = arith.constant 0 : i32
    return %c0_i32, %c0_i32_0 : i32, i32
  }
  func.func @transform_5(%arg0: i32) -> (i32, i32) {
    %c0_i32 = arith.constant 0 : i32
    %c0_i32_0 = arith.constant 0 : i32
    return %arg0, %c0_i32 : i32, i32
  }
}

</mosaic_0001>

<bundles_post_ra>
// kernel: tpu_custom_call.1
= control target key start
LH: loop header
LB: loop body
LE: loop exit
PB: predicated region body
PF: predicated region fallthrough
CT: control target
= control target key end

     0   :  { %10 = vsyncpa [#allocation3], 0  ;;  %s2855_s0 = inlined_call_operand.hbm [shape: f32[2,784], index: 0, kind: input, shape index: {}]   ;;  %s2856_s1 = inlined_call_operand.hbm [shape: bf16[784,512], index: 1, kind: input, shape index: {}]   ;;  %s2857_s2 = inlined_call_operand.hbm [shape: f32[1,512], index: 2, kind: input, shape index: {}]   ;;  %s2858_s3 = inlined_call_operand.hbm [shape: bf16[512,128], index: 3, kind: input, shape index: {}]   ;;  %s2859_s4 = inlined_call_operand.vmem [shape: f32[1,128], index: 4, kind: input, shape index: {}]   ;;  %s2860_s5 = inlined_call_operand.hbm [shape: f32[2,128], index: 5, kind: output, shape index: {}]  }
   0x1   :  { %11 = vsyncpa [#allocation6], 0 }
   0x2   :  { %12 = vsyncpa [#allocation9], 0 }
   0x3   :  { %13 = vsyncpa [#allocation4], 0  ;;  %s2745_s18 = smov [#allocation5]  }
   0x4   :  { %s29_s19 = sshll.u32 %s2745_s18, 4  ;;  %s30_s19 = int_to_ptr.vmem [resolvable:$true] %s29_s19 }
   0x5   :  { %s2645_s20 = scalar_lea.vmem %s30_s19, 25088  ;;  %p2650_p1 = scmp.lt.s32.totalorder %s30_s19, %s30_s19 }
   0x6   :  { %p2646_p0 = scmp.ne.s32.totalorder %s30_s19, %s2645_s20  ;;  %p2651_p2 = scmp.lt.s32.totalorder %s2645_s20, %s2645_s20 }
   0x8   :  { %p2652_p3 = por %p2651_p2, %p2650_p1 }
   0xa   :  { %p2653_p4 = pnand %p2652_p3, %p2646_p0 }
   0xc   :  { %2656 = shalt.err (!%p2653_p4)
}
   0xd   :  { %s2746_s21 = smov 256   ;;  %s2747_s22 = smov 16  }
   0xe   :  { %35 = dma.hbm_to_vmem [thread:$0]  %s2856_s1, 25088, %s30_s19, [#allocation6], %s2746_s21, %s2746_s21, %s2747_s22  }
   0xf   :  { %s2748_s25 = smov [#allocation2]   ;;  %s2749_s27 = smov [#allocation7]  }
  0x10   :  { %s20_s26 = sshll.u32 %s2748_s25, 4  ;;  %s42_s28 = sshll.u32 %s2749_s27, 4  ;;  %s21_s26 = int_to_ptr.vmem [resolvable:$true] %s20_s26  ;;  %s43_s28 = int_to_ptr.vmem [resolvable:$true] %s42_s28 }
  0x11   :  { %s2665_s29 = scalar_lea.vmem %s21_s26, 224  ;;  %p2670_p6 = scmp.lt.s32.totalorder %s21_s26, %s21_s26 }
  0x12   :  { %p2666_p5 = scmp.ne.s32.totalorder %s21_s26, %s2665_s29  ;;  %p2671_p7 = scmp.lt.s32.totalorder %s2665_s29, %s2665_s29 }
  0x14   :  { %p2672_p8 = por %p2671_p7, %p2670_p6 }
  0x16   :  { %p2673_p9 = pnand %p2672_p8, %p2666_p5 }
  0x18   :  { %2676 = shalt.err (!%p2673_p9)
}
  0x19   :  { %23 = dma.hbm_to_vmem [thread:$0]  %s2855_s0, 224, %s21_s26, [#allocation3]  }
  0x1a   :  { %s2685_s7 = scalar_lea.vmem %s43_s28, 64  ;;  %p2690_p11 = scmp.lt.s32.totalorder %s43_s28, %s43_s28 }
  0x1b   :  { %p2686_p10 = scmp.ne.s32.totalorder %s43_s28, %s2685_s7  ;;  %p2691_p12 = scmp.lt.s32.totalorder %s2685_s7, %s2685_s7 }
  0x1d   :  { %p2692_p13 = por %p2691_p12, %p2690_p11 }
  0x1f   :  { %p2693_p0 = pnand %p2692_p13, %p2686_p10 }
  0x21   :  { %2696 = shalt.err (!%p2693_p0)
}
  0x22   :  { %45 = dma.hbm_to_vmem [thread:$0]  %s2857_s2, 64, %s43_s28, [#allocation6]  }
  0x23   :  { %s2750_s9 = smov [#allocation8]  }
  0x24   :  { %s51_s10 = sshll.u32 %s2750_s9, 4  ;;  %s52_s10 = int_to_ptr.vmem [resolvable:$true] %s51_s10 }
  0x25   :  { %s2705_s11 = scalar_lea.vmem %s52_s10, 4096  ;;  %p2710_p2 = scmp.lt.s32.totalorder %s52_s10, %s52_s10 }
  0x26   :  { %p2706_p1 = scmp.ne.s32.totalorder %s52_s10, %s2705_s11  ;;  %p2711_p3 = scmp.lt.s32.totalorder %s2705_s11, %s2705_s11 }
  0x28   :  { %p2712_p4 = por %p2711_p3, %p2710_p2 }
  0x2a   :  { %p2713_p5 = pnand %p2712_p4, %p2706_p1 }
  0x2c   :  { %2716 = shalt.err (!%p2713_p5)
}
  0x2d   :  { %s2751_s0 = smov 64   ;;  %s2752_s12 = smov 4  }
  0x2e   :  { %57 = dma.hbm_to_vmem [thread:$0]  %s2858_s3, 4096, %s52_s10, [#allocation9], %s2751_s0, %s2751_s0, %s2752_s12  }
  0x2f   :  { %2737 = dma.done.wait [#allocation3], 224  }
  0x30   :  { %2738 = vsyncadd [#allocation3], 4294967072 }
  0x31   :  { %2739 = dma.done.wait [#allocation6], 25152  }
  0x32   :  { %2740 = vsyncadd [#allocation6], 4294942144 }
  0x33   :  { %2741 = dma.done.wait [#allocation9], 4096  }
  0x34   :  { %2742 = vsyncadd [#allocation9], 4294963200  ;;  %v2309_v0 = vld [vmem:[#allocation5 + $0xe4] ss:$16 sps:$4 sm:$0xff]   ;;  %v2313_v2 = vld [vmem:[#allocation5 + $0xe0] ss:$16 sps:$4 sm:$0xff]   ;;  %v81_v38 = vlaneseq }
  0x35   :  { %v2311_v1 = vld [vmem:[#allocation5 + $0x2e4] ss:$16 sps:$4 sm:$0xff]   ;;  %1326 = vmatprep.subr.bf16.mxu0 %v2309_v0  ;;  %v2314_v3 = vld [vmem:[#allocation5 + $0x2e0] ss:$16 sps:$4 sm:$0xff]   ;;  %v2753_v36 = vmov 1983009808  }
  0x36   :  { %1367 = vmatprep.subr.bf16.mxu1 %v2311_v1  ;;  %v2315_v4 = vld [vmem:[#allocation5 + $0xc4] ss:$16 sps:$4 sm:$0xff]   ;;  %1327 = vmatpush1.bf16.msra.mxu0 %v2313_v2  ;;  %v2319_v6 = vld [vmem:[#allocation5 + $0xc0] ss:$16 sps:$4 sm:$0xff]   ;;  %v79_v37 = vunpack.c.l.s4 %v2753_v36  ;;  %v2798_v43 = vshrl.u32 %v81_v38, 7  ;;  %vm1322_vm0 = vcmask 130048  }
  0x37   :  { %1368 = vmatpush1.bf16.msra.mxu1 %v2314_v3  ;;  %v2317_v5 = vld [vmem:[#allocation5 + $0x2c4] ss:$16 sps:$4 sm:$0xff]   ;;  %1328 = vmatprep.subr.bf16.mxu0 %v2315_v4  ;;  %v2320_v7 = vld [vmem:[#allocation5 + $0x2c0] ss:$16 sps:$4 sm:$0xff]   ;;  %v2422_v36 = vld [vmem:[#allocation5 + $0xc8] ss:$16 sps:$4 sm:$0xff]  }
  0x38   :  { %1369 = vmatprep.subr.bf16.mxu1 %v2317_v5  ;;  %v2321_v8 = vld [vmem:[#allocation5 + $0xa4] ss:$16 sps:$4 sm:$0xff]   ;;  %v2325_v10 = vld [vmem:[#allocation5 + $0xa0] ss:$16 sps:$4 sm:$0xff]   ;;  %v80_v42 = vunpack.c.0.s8 %v79_v37  ;;  %v2430_v38 = vld [vmem:[#allocation5 + $0xac] ss:$16 sps:$4 sm:$0xff]  }
  0x39   :  { %v2323_v9 = vld [vmem:[#allocation5 + $0x2a4] ss:$16 sps:$4 sm:$0xff]   ;;  %v2326_v11 = vld [vmem:[#allocation5 + $0x2a0] ss:$16 sps:$4 sm:$0xff]   ;;  %s2755_s15 = smov [#allocation10]  }
  0x3a   :  { %1329 = vmatpush1.bf16.msra.mxu0 %v2319_v6  ;;  %v2327_v12 = vld [vmem:[#allocation5 + $0x84] ss:$16 sps:$4 sm:$0xff]   ;;  %v2331_v14 = vld [vmem:[#allocation5 + $0x80] ss:$16 sps:$4 sm:$0xff]   ;;  %v2801_v49 = vsub.s32 %v80_v42, %v2798_v43  ;;  %v2436_v42 = vld [vmem:[#allocation5 + $0x8c] ss:$16 sps:$4 sm:$0xff]  }
  0x3b   :  { %1370 = vmatpush1.bf16.msra.mxu1 %v2320_v7  ;;  %1330 = vmatprep.subr.bf16.mxu0 %v2321_v8  ;;  %v2329_v13 = vld [vmem:[#allocation5 + $0x284] ss:$16 sps:$4 sm:$0xff]   ;;  %v2332_v15 = vld [vmem:[#allocation5 + $0x280] ss:$16 sps:$4 sm:$0xff]   ;;  %s2012_s16 = sshll.u32 %s2755_s15, 4  ;;  %s2013_s16 = int_to_ptr.vmem [resolvable:$true] %s2012_s16 }
  0x3c   :  { %1371 = vmatprep.subr.bf16.mxu1 %v2323_v9  ;;  %v2333_v16 = vld [vmem:[#allocation5 + $0x64] ss:$16 sps:$4 sm:$0xff]   ;;  %v2337_v18 = vld [vmem:[#allocation5 + $0x60] ss:$16 sps:$4 sm:$0xff]   ;;  %s2717_s17 = scalar_lea.vmem %s2013_s16, 32  ;;  %p2722_p7 = scmp.lt.s32.totalorder %s2013_s16, %s2013_s16 }
  0x3d   :  { %v2335_v17 = vld [vmem:[#allocation5 + $0x264] ss:$16 sps:$4 sm:$0xff]   ;;  %v2338_v19 = vld [vmem:[#allocation5 + $0x260] ss:$16 sps:$4 sm:$0xff]   ;;  %p2718_p6 = scmp.ne.s32.totalorder %s2013_s16, %s2717_s17  ;;  %p2723_p8 = scmp.lt.s32.totalorder %s2717_s17, %s2717_s17 }
  0x3e   :  { %1331 = vmatpush1.bf16.msra.mxu0 %v2325_v10  ;;  %v2339_v20 = vld [vmem:[#allocation5 + $0x44] ss:$16 sps:$4 sm:$0xff]   ;;  %v2343_v22 = vld [vmem:[#allocation5 + $0x40] ss:$16 sps:$4 sm:$0xff]  }
  0x3f   :  { %1372 = vmatpush1.bf16.msra.mxu1 %v2326_v11  ;;  %1332 = vmatprep.subr.bf16.mxu0 %v2327_v12  ;;  %v2341_v21 = vld [vmem:[#allocation5 + $0x244] ss:$16 sps:$4 sm:$0xff]   ;;  %v2344_v23 = vld [vmem:[#allocation5 + $0x240] ss:$16 sps:$4 sm:$0xff]   ;;  %v74_v12 = vld [vmem:[#allocation2 + $0x8] sm:$0x3f]  ;;  %p2724_p9 = por %p2723_p8, %p2722_p7 }
  0x40   :  { %1373 = vmatprep.subr.bf16.mxu1 %v2329_v13  ;;  %v2345_v24 = vld [vmem:[#allocation5 + $0x24] ss:$16 sps:$4 sm:$0xff]   ;;  %v2349_v26 = vld [vmem:[#allocation5 + $0x20] ss:$16 sps:$4 sm:$0xff]   ;;  %v2812_v13 = vrot.slane %v74_v12, %v2801_v49 }
  0x41   :  { %v2347_v25 = vld [vmem:[#allocation5 + $0x224] ss:$16 sps:$4 sm:$0xff]   ;;  %v2350_v27 = vld [vmem:[#allocation5 + $0x220] ss:$16 sps:$4 sm:$0xff]   ;;  %p2725_p10 = pnand %p2724_p9, %p2718_p6 }
  0x42   :  { %1333 = vmatpush1.bf16.msra.mxu0 %v2331_v14  ;;  %v2351_v28 = vld [vmem:[#allocation5 + $0x4] ss:$16 sps:$4 sm:$0xff]   ;;  %v2355_v30 = vld [vmem:[#allocation5] ss:$16 sps:$4 sm:$0xff]  }
  0x43   :  { %1374 = vmatpush1.bf16.msra.mxu1 %v2332_v15  ;;  %1334 = vmatprep.subr.bf16.mxu0 %v2333_v16  ;;  %v2353_v29 = vld [vmem:[#allocation5 + $0x204] ss:$16 sps:$4 sm:$0xff]   ;;  %v2356_v31 = vld [vmem:[#allocation5 + $0x200] ss:$16 sps:$4 sm:$0xff]  }
  0x44   :  { %1375 = vmatprep.subr.bf16.mxu1 %v2335_v17  ;;  %v2357_v32 = vld [vmem:[#allocation5 + $0x1e4] ss:$16 sps:$4 sm:$0xff]   ;;  %v2361_v34 = vld [vmem:[#allocation5 + $0x1e0] ss:$16 sps:$4 sm:$0xff]  }
  0x45   :  { %v2359_v33 = vld [vmem:[#allocation5 + $0x3e4] ss:$16 sps:$4 sm:$0xff]   ;;  %v2362_v35 = vld [vmem:[#allocation5 + $0x3e0] ss:$16 sps:$4 sm:$0xff]  }
  0x46   :  { %1335 = vmatpush1.bf16.msra.mxu0 %v2337_v18  ;;  %v2363_v39 = vld [vmem:[#allocation5 + $0x1c4] ss:$16 sps:$4 sm:$0xff]   ;;  %v2367_v41 = vld [vmem:[#allocation5 + $0x1c0] ss:$16 sps:$4 sm:$0xff]   ;;  %v109_v18 = vcombine.high %v2812_v13, %v2812_v13 }
  0x47   :  { %1376 = vmatpush1.bf16.msra.mxu1 %v2338_v19  ;;  %1336 = vmatprep.subr.bf16.mxu0 %v2339_v20  ;;  %v2365_v40 = vld [vmem:[#allocation5 + $0x3c4] ss:$16 sps:$4 sm:$0xff]   ;;  %v2368_v44 = vld [vmem:[#allocation5 + $0x3c0] ss:$16 sps:$4 sm:$0xff]  }
  0x48   :  { %1377 = vmatprep.subr.bf16.mxu1 %v2341_v21  ;;  %v2369_v45 = vld [vmem:[#allocation5 + $0x1a4] ss:$16 sps:$4 sm:$0xff]   ;;  %v2373_v47 = vld [vmem:[#allocation5 + $0x1a0] ss:$16 sps:$4 sm:$0xff]   ;;  %v94_v21 = vcombine.high %v74_v12, %v74_v12  ;;  %v2484_v12 = vld [vmem:[#allocation5 + $0x18c] ss:$16 sps:$4 sm:$0xff]  }
  0x49   :  { %v2371_v46 = vld [vmem:[#allocation5 + $0x3a4] ss:$16 sps:$4 sm:$0xff]   ;;  %v2374_v48 = vld [vmem:[#allocation5 + $0x3a0] ss:$16 sps:$4 sm:$0xff]  }
  0x4a   :  { %1337 = vmatpush1.bf16.msra.mxu0 %v2343_v22  ;;  %v2375_v50 = vld [vmem:[#allocation5 + $0x184] ss:$16 sps:$4 sm:$0xff]   ;;  %v2379_v53 = vld [vmem:[#allocation5 + $0x180] ss:$16 sps:$4 sm:$0xff]  }
  0x4b   :  { %1378 = vmatpush1.bf16.msra.mxu1 %v2344_v23  ;;  %1338 = vmatprep.subr.bf16.mxu0 %v2345_v24  ;;  %v2377_v51 = vld [vmem:[#allocation5 + $0x384] ss:$16 sps:$4 sm:$0xff]   ;;  %v2380_v56 = vld [vmem:[#allocation5 + $0x380] ss:$16 sps:$4 sm:$0xff]  }
  0x4c   :  { %1379 = vmatprep.subr.bf16.mxu1 %v2347_v25  ;;  %v73_v52 = vld [vmem:[#allocation2] sm:$0xff]  ;;  %v2417_v25 = vld [vmem:[#allocation5 + $0xec] ss:$16 sps:$4 sm:$0xff]  }
  0x4d   :  { %v84_v54 = vrot.slane %v73_v52, %v2801_v49  ;;  %v77_v55 = vcombine.high %v73_v52, %v73_v52  ;;  %v2381_v57 = vld [vmem:[#allocation5 + $0x164] ss:$16 sps:$4 sm:$0xff]   ;;  %v2385_v61 = vld [vmem:[#allocation5 + $0x160] ss:$16 sps:$4 sm:$0xff]  }
  0x4e   :  { %1339 = vmatpush1.bf16.msra.mxu0 %v2349_v26  ;;  %v2383_v58 = vld [vmem:[#allocation5 + $0x364] ss:$16 sps:$4 sm:$0xff]   ;;  %v2386_v0 = vld [vmem:[#allocation5 + $0x360] ss:$16 sps:$4 sm:$0xff]   ;;  %v2820_v26 = vpack.c.bf16 %v109_v18, %v109_v18 }
  0x4f   :  { %1380 = vmatpush1.bf16.msra.mxu1 %v2350_v27  ;;  %1340 = vmatprep.subr.bf16.mxu0 %v2351_v28  ;;  %v92_v59 = vcombine.high %v84_v54, %v84_v54  ;;  %v91_v60 = vrot.slane %v77_v55, %v2801_v49  ;;  %v2387_v1 = vld [vmem:[#allocation5 + $0x144] ss:$16 sps:$4 sm:$0xff]   ;;  %v2391_v4 = vld [vmem:[#allocation5 + $0x140] ss:$16 sps:$4 sm:$0xff]   ;;  %v2816_v19 = vpack.c.bf16 %v84_v54, %v84_v54  ;;  %v2454_v55 = vld [vmem:[#allocation5 + $0x2c] ss:$16 sps:$4 sm:$0xff]  }
  0x50   :  { %1381 = vmatprep.subr.bf16.mxu1 %v2353_v29  ;;  %v2389_v2 = vld [vmem:[#allocation5 + $0x344] ss:$16 sps:$4 sm:$0xff]   ;;  %v2392_v5 = vld [vmem:[#allocation5 + $0x340] ss:$16 sps:$4 sm:$0xff]   ;;  %v108_v27 = vrot.slane %v94_v21, %v2801_v49  ;;  %v2754_v29 = vmov 0  }
  0x51   :  { %v2805_v62 = vpack.c.bf16 %v92_v59, %v92_v59  ;;  %v93_v63 = vcombine.high %v91_v60, %v91_v60  ;;  %v2393_v6 = vld [vmem:[#allocation5 + $0x124] ss:$16 sps:$4 sm:$0xff]   ;;  %v2397_v8 = vld [vmem:[#allocation5 + $0x120] ss:$16 sps:$4 sm:$0xff]   ;;  %v2818_v20 = vpack.c.bf16 %v91_v60, %v91_v60  ;;  %v2440_v49 = vld [vmem:[#allocation5 + $0x68] ss:$16 sps:$4 sm:$0xff]  }
  0x52   :  { %1341 = vmatpush1.bf16.msra.mxu0 %v2355_v30  ;;  %v2395_v7 = vld [vmem:[#allocation5 + $0x324] ss:$16 sps:$4 sm:$0xff]   ;;  %v2398_v9 = vld [vmem:[#allocation5 + $0x320] ss:$16 sps:$4 sm:$0xff]   ;;  %v2460_v59 = vld [vmem:[#allocation5 + $0xc] ss:$16 sps:$4 sm:$0xff]  }
  0x53   :  { %1382 = vmatpush1.bf16.msra.mxu1 %v2356_v31  ;;  %1342 = vmatprep.subr.bf16.mxu0 %v2357_v32  ;;  %v2807_v3 = vpack.c.bf16 %v93_v63, %v93_v63  ;;  %v2399_v10 = vld [vmem:[#allocation5 + $0x104] ss:$16 sps:$4 sm:$0xff]   ;;  %v2403_v14 = vld [vmem:[#allocation5 + $0x100] ss:$16 sps:$4 sm:$0xff]   ;;  %v2827_v31 = vpack.c.bf16 %v108_v27, %v108_v27  ;;  %v2415_v32 = vld [vmem:[#allocation5 + $0xe8] ss:$16 sps:$4 sm:$0xff]  }
  0x54   :  { %1383 = vmatprep.subr.bf16.mxu1 %v2359_v33  ;;  %1358 = vmatprep.mubr.bf16.mxu0 %v2805_v62  ;;  %v2401_v11 = vld [vmem:[#allocation5 + $0x304] ss:$16 sps:$4 sm:$0xff]   ;;  %v2404_v15 = vld [vmem:[#allocation5 + $0x300] ss:$16 sps:$4 sm:$0xff]   ;;  %v2466_v63 = vld [vmem:[#allocation5 + $0x1ec] ss:$16 sps:$4 sm:$0xff]  }
  0x55   :  { %1399 = vmatprep.mubr.bf16.mxu1 %v2807_v3  ;;  %v2408_v16 = vld [vmem:[#allocation5 + $0x4e4] ss:$16 sps:$4 sm:$0xff]   ;;  %v2406_v22 = vld [vmem:[#allocation5 + $0x4e0] ss:$16 sps:$4 sm:$0xff]   ;;  %v2488_v21 = vld [vmem:[#allocation5 + $0x168] ss:$16 sps:$4 sm:$0xff]  }
  0x56   :  { %1343 = vmatpush2.bf16.msra.mxu0 %v2361_v34  ;;  %v2411_v17 = vld [vmem:[#allocation5 + $0x604] ss:$16 sps:$4 sm:$0xff]   ;;  %v2409_v23 = vld [vmem:[#allocation5 + $0x600] ss:$16 sps:$4 sm:$0xff]   ;;  %v2424_v34 = vld [vmem:[#allocation5 + $0xcc] ss:$16 sps:$4 sm:$0xff]  }
  0x57   :  { %1384 = vmatpush2.bf16.msra.mxu1 %v2362_v35  ;;  %1344 = vmatprep.subr.bf16.mxu0 %v2363_v39  ;;  %v2414_v24 = vld [vmem:[#allocation5 + $0x4c4] ss:$16 sps:$4 sm:$0xff]   ;;  %v2412_v28 = vld [vmem:[#allocation5 + $0x4c0] ss:$16 sps:$4 sm:$0xff]  }
  0x58   :  { %1385 = vmatprep.subr.bf16.mxu1 %v2365_v40  ;;  %v2420_v30 = vld [vmem:[#allocation5 + $0x4a4] ss:$16 sps:$4 sm:$0xff]   ;;  %v2418_v33 = vld [vmem:[#allocation5 + $0x4a0] ss:$16 sps:$4 sm:$0xff]   ;;  %v2428_v40 = vld [vmem:[#allocation5 + $0xa8] ss:$16 sps:$4 sm:$0xff]  }
  0x59   :  { %v2427_v35 = vld [vmem:[#allocation5 + $0x484] ss:$16 sps:$4 sm:$0xff]   ;;  %v2425_v37 = vld [vmem:[#allocation5 + $0x480] ss:$16 sps:$4 sm:$0xff]  }
  0x5a   :  { %1345 = vmatpush2.bf16.msra.mxu0 %v2367_v41  ;;  %v2433_v39 = vld [vmem:[#allocation5 + $0x464] ss:$16 sps:$4 sm:$0xff]   ;;  %v2431_v41 = vld [vmem:[#allocation5 + $0x460] ss:$16 sps:$4 sm:$0xff]  }
  0x5b   :  { %1386 = vmatpush2.bf16.msra.mxu1 %v2368_v44  ;;  %1346 = vmatprep.subr.bf16.mxu0 %v2369_v45  ;;  %v2439_v44 = vld [vmem:[#allocation5 + $0x444] ss:$16 sps:$4 sm:$0xff]   ;;  %v2434_v45 = vld [vmem:[#allocation5 + $0x88] ss:$16 sps:$4 sm:$0xff]   ;;  %v2449_v54 = vld [vmem:[#allocation5 + $0x400] ss:$16 sps:$4 sm:$0xff]  }
  0x5c   :  { %1387 = vmatprep.subr.bf16.mxu1 %v2371_v46  ;;  %v2437_v46 = vld [vmem:[#allocation5 + $0x440] ss:$16 sps:$4 sm:$0xff]   ;;  %v2451_v52 = vld [vmem:[#allocation5 + $0x404] ss:$16 sps:$4 sm:$0xff]  }
  0x5d   :  { %v2463_v60 = vld [vmem:[#allocation5 + $0x5c4] ss:$16 sps:$4 sm:$0xff]   ;;  %v2497_v27 = vld [vmem:[#allocation5 + $0x500] ss:$16 sps:$4 sm:$0xff]  }
  0x5e   :  { %1347 = vmatpush2.bf16.msra.mxu0 %v2373_v47  ;;  %v2442_v47 = vld [vmem:[#allocation5 + $0x6c] ss:$16 sps:$4 sm:$0xff]   ;;  %v2493_v18 = vld [vmem:[#allocation5 + $0x524] ss:$16 sps:$4 sm:$0xff]  }
  0x5f   :  { %1388 = vmatpush2.bf16.msra.mxu1 %v2374_v48  ;;  %1348 = vmatprep.subr.bf16.mxu0 %v2375_v50  ;;  %v2445_v48 = vld [vmem:[#allocation5 + $0x424] ss:$16 sps:$4 sm:$0xff]   ;;  %v2443_v50 = vld [vmem:[#allocation5 + $0x420] ss:$16 sps:$4 sm:$0xff]  }
  0x60   :  { %1389 = vmatprep.subr.bf16.mxu1 %v2377_v51  ;;  %v2448_v51 = vld [vmem:[#allocation5 + $0x4c] ss:$16 sps:$4 sm:$0xff]  }
  0x62   :  { %1349 = vmatpush2.bf16.msra.mxu0 %v2379_v53  ;;  %v2446_v53 = vld [vmem:[#allocation5 + $0x48] ss:$16 sps:$4 sm:$0xff]  }
  0x63   :  { %1390 = vmatpush2.bf16.msra.mxu1 %v2380_v56  ;;  %1350 = vmatprep.subr.bf16.mxu0 %v2381_v57  ;;  %v2457_v56 = vld [vmem:[#allocation5 + $0x5e4] ss:$16 sps:$4 sm:$0xff]   ;;  %v2452_v57 = vld [vmem:[#allocation5 + $0x28] ss:$16 sps:$4 sm:$0xff]  }
  0x64   :  { %1391 = vmatprep.subr.bf16.mxu1 %v2383_v58  ;;  %v2455_v58 = vld [vmem:[#allocation5 + $0x5e0] ss:$16 sps:$4 sm:$0xff]  }
  0x66   :  { %1351 = vmatpush2.bf16.msra.mxu0 %v2385_v61  ;;  %v2458_v61 = vld [vmem:[#allocation5 + $0x8] ss:$16 sps:$4 sm:$0xff]  }
  0x67   :  { %1392 = vmatpush2.bf16.msra.mxu1 %v2386_v0  ;;  %1352 = vmatprep.subr.bf16.mxu0 %v2387_v1  ;;  %v2469_v0 = vld [vmem:[#allocation5 + $0x5a4] ss:$16 sps:$4 sm:$0xff]   ;;  %v2464_v1 = vld [vmem:[#allocation5 + $0x1e8] ss:$16 sps:$4 sm:$0xff]  }
  0x68   :  { %1393 = vmatprep.subr.bf16.mxu1 %v2389_v2  ;;  %v2467_v2 = vld [vmem:[#allocation5 + $0x5a0] ss:$16 sps:$4 sm:$0xff]  }
  0x6a   :  { %1353 = vmatpush2.bf16.msra.mxu0 %v2391_v4  ;;  %v2472_v4 = vld [vmem:[#allocation5 + $0x1cc] ss:$16 sps:$4 sm:$0xff]  }
  0x6b   :  { %1394 = vmatpush2.bf16.msra.mxu1 %v2392_v5  ;;  %1354 = vmatprep.subr.bf16.mxu0 %v2393_v6  ;;  %v2475_v5 = vld [vmem:[#allocation5 + $0x584] ss:$16 sps:$4 sm:$0xff]   ;;  %v2470_v6 = vld [vmem:[#allocation5 + $0x1c8] ss:$16 sps:$4 sm:$0xff]  }
  0x6c   :  { %1395 = vmatprep.subr.bf16.mxu1 %v2395_v7  ;;  %v2473_v7 = vld [vmem:[#allocation5 + $0x580] ss:$16 sps:$4 sm:$0xff]  }
  0x6e   :  { %1355 = vmatpush2.bf16.msra.mxu0 %v2397_v8  ;;  %v2478_v8 = vld [vmem:[#allocation5 + $0x1ac] ss:$16 sps:$4 sm:$0xff]  }
  0x6f   :  { %1396 = vmatpush2.bf16.msra.mxu1 %v2398_v9  ;;  %1356 = vmatprep.subr.bf16.mxu0 %v2399_v10  ;;  %v2481_v9 = vld [vmem:[#allocation5 + $0x564] ss:$16 sps:$4 sm:$0xff]   ;;  %v2476_v10 = vld [vmem:[#allocation5 + $0x1a8] ss:$16 sps:$4 sm:$0xff]  }
  0x70   :  { %1397 = vmatprep.subr.bf16.mxu1 %v2401_v11  ;;  %v2479_v11 = vld [vmem:[#allocation5 + $0x560] ss:$16 sps:$4 sm:$0xff]  }
  0x72   :  { %1357 = vmatpush2.bf16.msra.mxu0 %v2403_v14  ;;  %v2487_v14 = vld [vmem:[#allocation5 + $0x544] ss:$16 sps:$4 sm:$0xff]  }
  0x73   :  { %1398 = vmatpush2.bf16.msra.mxu1 %v2404_v15  ;;  %1408 = vmatprep.subr.bf16.mxu0 %v2408_v16  ;;  %v2482_v15 = vld [vmem:[#allocation5 + $0x188] ss:$16 sps:$4 sm:$0xff]   ;;  %v2485_v16 = vld [vmem:[#allocation5 + $0x540] ss:$16 sps:$4 sm:$0xff]  }
  0x74   :  { %1463 = vmatprep.subr.bf16.mxu1 %v2411_v17  ;;  %v2490_v17 = vld [vmem:[#allocation5 + $0x16c] ss:$16 sps:$4 sm:$0xff]  }
  0x75   :  { %1359 = vmatmul.mubr.bf16.vlgmr.msra.gmra.mxu0 %v2816_v19 }
  0x76   :  { %1400 = vmatmul.mubr.bf16.vlgmr.msra.gmra.mxu1 %v2818_v20  ;;  %1409 = vmatpush1.bf16.msra.mxu0 %v2406_v22  ;;  %v2491_v22 = vld [vmem:[#allocation5 + $0x520] ss:$16 sps:$4 sm:$0xff]  }
  0x77   :  { %1464 = vmatpush1.bf16.msra.mxu1 %v2409_v23  ;;  %1410 = vmatprep.subr.bf16.mxu0 %v2414_v24  ;;  %v2496_v23 = vld [vmem:[#allocation5 + $0x14c] ss:$16 sps:$4 sm:$0xff]   ;;  %v2499_v24 = vld [vmem:[#allocation5 + $0x504] ss:$16 sps:$4 sm:$0xff]  }
  0x78   :  { %1481 = vmatprep.mubr.bf16.mxu1 %v2754_v29  ;;  %1490 = vmatprep.subr.bf16.mxu1 %v2417_v25  ;;  %v2494_v25 = vld [vmem:[#allocation5 + $0x148] ss:$16 sps:$4 sm:$0xff]  }
  0x79   :  { %1440 = vmatprep.mubr.bf16.mxu0 %v2820_v26 }
  0x7a   :  { %1411 = vmatpush1.bf16.msra.mxu0 %v2412_v28  ;;  %v2502_v28 = vld [vmem:[#allocation5 + $0x12c] ss:$16 sps:$4 sm:$0xff]  }
  0x7b   :  { %1412 = vmatprep.subr.bf16.mxu0 %v2420_v30  ;;  %v2505_v30 = vld [vmem:[#allocation5 + $0x2ec] ss:$16 sps:$4 sm:$0xff]  }
  0x7e   :  { %2219 = vmatmul.mubr.msk.bf16.vlgmr.msra.gmra.mxu1 %vm1322_vm0, %v2827_v31  ;;  %1413 = vmatpush1.bf16.msra.mxu0 %v2418_v33  ;;  %v2500_v33 = vld [vmem:[#allocation5 + $0x128] ss:$16 sps:$4 sm:$0xff]  }
  0x7f   :  { %1491 = vmatpush1.bf16.msra.mxu1 %v2415_v32  ;;  %1414 = vmatprep.subr.bf16.mxu0 %v2427_v35  ;;  %v2834_v32 = vpack.c.bf16 %v2812_v13, %v2812_v13  ;;  %v2508_v35 = vld [vmem:[#allocation5 + $0x10c] ss:$16 sps:$4 sm:$0xff]   ;;  %v2512_v13 = vld [vmem:[#allocation5 + $0x4e8] ss:$16 sps:$4 sm:$0xff]  }
  0x80   :  { %1492 = vmatprep.subr.bf16.mxu1 %v2424_v34  ;;  %1522 = vmatprep.mubr.bf16.mxu1 %v2805_v62  ;;  %v2461_v62 = vld [vmem:[#allocation5 + $0x5c0] ss:$16 sps:$4 sm:$0xff]   ;;  %v2503_v34 = vld [vmem:[#allocation5 + $0x2e8] ss:$16 sps:$4 sm:$0xff]  }
  0x82   :  { %1415 = vmatpush1.bf16.msra.mxu0 %v2425_v37  ;;  %v2506_v37 = vld [vmem:[#allocation5 + $0x108] ss:$16 sps:$4 sm:$0xff]  }
  0x83   :  { %1493 = vmatpush1.bf16.msra.mxu1 %v2422_v36  ;;  %1416 = vmatprep.subr.bf16.mxu0 %v2433_v39  ;;  %v2511_v36 = vld [vmem:[#allocation5 + $0x2cc] ss:$16 sps:$4 sm:$0xff]  }
  0x84   :  { %1494 = vmatprep.subr.bf16.mxu1 %v2430_v38  ;;  %v2509_v38 = vld [vmem:[#allocation5 + $0x2c8] ss:$16 sps:$4 sm:$0xff]   ;;  %v2514_v39 = vld [vmem:[#allocation5 + $0x4ec] ss:$16 sps:$4 sm:$0xff]  }
  0x86   :  { %1417 = vmatpush1.bf16.msra.mxu0 %v2431_v41  ;;  %v2515_v41 = vld [vmem:[#allocation5 + $0x2a8] ss:$16 sps:$4 sm:$0xff]  }
  0x87   :  { %1495 = vmatpush1.bf16.msra.mxu1 %v2428_v40  ;;  %1418 = vmatprep.subr.bf16.mxu0 %v2439_v44  ;;  %v2517_v40 = vld [vmem:[#allocation5 + $0x2ac] ss:$16 sps:$4 sm:$0xff]  }
  0x88   :  { %1496 = vmatprep.subr.bf16.mxu1 %v2436_v42  ;;  %v2520_v42 = vld [vmem:[#allocation5 + $0x4cc] ss:$16 sps:$4 sm:$0xff]  }
  0x89   :  { %v2523_v44 = vld [vmem:[#allocation5 + $0x28c] ss:$16 sps:$4 sm:$0xff]  }
  0x8a   :  { %1419 = vmatpush1.bf16.msra.mxu0 %v2437_v46  ;;  %v2521_v46 = vld [vmem:[#allocation5 + $0x288] ss:$16 sps:$4 sm:$0xff]  }
  0x8b   :  { %1497 = vmatpush1.bf16.msra.mxu1 %v2434_v45  ;;  %1420 = vmatprep.subr.bf16.mxu0 %v2445_v48  ;;  %v2518_v45 = vld [vmem:[#allocation5 + $0x4c8] ss:$16 sps:$4 sm:$0xff]   ;;  %v2529_v48 = vld [vmem:[#allocation5 + $0x26c] ss:$16 sps:$4 sm:$0xff]  }
  0x8c   :  { %1498 = vmatprep.subr.bf16.mxu1 %v2442_v47  ;;  %v2526_v47 = vld [vmem:[#allocation5 + $0x4ac] ss:$16 sps:$4 sm:$0xff]  }
  0x8e   :  { %1421 = vmatpush1.bf16.msra.mxu0 %v2443_v50  ;;  %v2527_v50 = vld [vmem:[#allocation5 + $0x268] ss:$16 sps:$4 sm:$0xff]  }
  0x8f   :  { %1499 = vmatpush1.bf16.msra.mxu1 %v2440_v49  ;;  %1422 = vmatprep.subr.bf16.mxu0 %v2451_v52  ;;  %v2524_v49 = vld [vmem:[#allocation5 + $0x4a8] ss:$16 sps:$4 sm:$0xff]  }
  0x90   :  { %1500 = vmatprep.subr.bf16.mxu1 %v2448_v51  ;;  %v2535_v51 = vld [vmem:[#allocation5 + $0x24c] ss:$16 sps:$4 sm:$0xff]   ;;  %v2530_v52 = vld [vmem:[#allocation5 + $0x488] ss:$16 sps:$4 sm:$0xff]  }
  0x92   :  { %1423 = vmatpush1.bf16.msra.mxu0 %v2449_v54  ;;  %v2538_v54 = vld [vmem:[#allocation5 + $0x46c] ss:$16 sps:$4 sm:$0xff]  }
  0x93   :  { %1501 = vmatpush1.bf16.msra.mxu1 %v2446_v53  ;;  %1424 = vmatprep.subr.bf16.mxu0 %v2457_v56  ;;  %v2533_v53 = vld [vmem:[#allocation5 + $0x248] ss:$16 sps:$4 sm:$0xff]  }
  0x94   :  { %1502 = vmatprep.subr.bf16.mxu1 %v2454_v55  ;;  %v2536_v55 = vld [vmem:[#allocation5 + $0x468] ss:$16 sps:$4 sm:$0xff]  }
  0x95   :  { %v2539_v56 = vld [vmem:[#allocation5 + $0x228] ss:$16 sps:$4 sm:$0xff]  }
  0x96   :  { %1425 = vmatpush2.bf16.msra.mxu0 %v2455_v58  ;;  %v2547_v58 = vld [vmem:[#allocation5 + $0x20c] ss:$16 sps:$4 sm:$0xff]  }
  0x97   :  { %1503 = vmatpush1.bf16.msra.mxu1 %v2452_v57  ;;  %1426 = vmatprep.subr.bf16.mxu0 %v2463_v60  ;;  %v2544_v57 = vld [vmem:[#allocation5 + $0x44c] ss:$16 sps:$4 sm:$0xff]  }
  0x98   :  { %1504 = vmatprep.subr.bf16.mxu1 %v2460_v59  ;;  %v2545_v59 = vld [vmem:[#allocation5 + $0x208] ss:$16 sps:$4 sm:$0xff]   ;;  %v2550_v60 = vld [vmem:[#allocation5 + $0x42c] ss:$16 sps:$4 sm:$0xff]  }
  0x9a   :  { %1427 = vmatpush2.bf16.msra.mxu0 %v2461_v62  ;;  %v2548_v62 = vld [vmem:[#allocation5 + $0x428] ss:$16 sps:$4 sm:$0xff]  }
  0x9b   :  { %1505 = vmatpush1.bf16.msra.mxu1 %v2458_v61  ;;  %1428 = vmatprep.subr.bf16.mxu0 %v2469_v0  ;;  %v2553_v61 = vld [vmem:[#allocation5 + $0x3ec] ss:$16 sps:$4 sm:$0xff]  }
  0x9c   :  { %1506 = vmatprep.subr.bf16.mxu1 %v2466_v63  ;;  %v2551_v63 = vld [vmem:[#allocation5 + $0x3e8] ss:$16 sps:$4 sm:$0xff]   ;;  %v2556_v0 = vld [vmem:[#allocation5 + $0x40c] ss:$16 sps:$4 sm:$0xff]  }
  0x9e   :  { %1429 = vmatpush2.bf16.msra.mxu0 %v2467_v2  ;;  %v2554_v2 = vld [vmem:[#allocation5 + $0x408] ss:$16 sps:$4 sm:$0xff]  }
  0x9f   :  { %1507 = vmatpush2.bf16.msra.mxu1 %v2464_v1  ;;  %1430 = vmatprep.subr.bf16.mxu0 %v2475_v5  ;;  %v2559_v1 = vld [vmem:[#allocation5 + $0x3cc] ss:$16 sps:$4 sm:$0xff]  }
  0xa0   :  { %1508 = vmatprep.subr.bf16.mxu1 %v2472_v4  ;;  %v2557_v4 = vld [vmem:[#allocation5 + $0x3c8] ss:$16 sps:$4 sm:$0xff]   ;;  %v2562_v5 = vld [vmem:[#allocation5 + $0x5ec] ss:$16 sps:$4 sm:$0xff]  }
  0xa2   :  { %1431 = vmatpush2.bf16.msra.mxu0 %v2473_v7  ;;  %v2560_v7 = vld [vmem:[#allocation5 + $0x5e8] ss:$16 sps:$4 sm:$0xff]  }
  0xa3   :  { %1509 = vmatpush2.bf16.msra.mxu1 %v2470_v6  ;;  %1432 = vmatprep.subr.bf16.mxu0 %v2481_v9  ;;  %v2565_v6 = vld [vmem:[#allocation5 + $0x3ac] ss:$16 sps:$4 sm:$0xff]  }
  0xa4   :  { %1510 = vmatprep.subr.bf16.mxu1 %v2478_v8  ;;  %v2563_v8 = vld [vmem:[#allocation5 + $0x3a8] ss:$16 sps:$4 sm:$0xff]   ;;  %v2568_v9 = vld [vmem:[#allocation5 + $0x5cc] ss:$16 sps:$4 sm:$0xff]  }
  0xa6   :  { %1433 = vmatpush2.bf16.msra.mxu0 %v2479_v11  ;;  %v2566_v11 = vld [vmem:[#allocation5 + $0x5c8] ss:$16 sps:$4 sm:$0xff]  }
  0xa7   :  { %1511 = vmatpush2.bf16.msra.mxu1 %v2476_v10  ;;  %1434 = vmatprep.subr.bf16.mxu0 %v2487_v14  ;;  %v2571_v10 = vld [vmem:[#allocation5 + $0x38c] ss:$16 sps:$4 sm:$0xff]  }
  0xa8   :  { %1512 = vmatprep.subr.bf16.mxu1 %v2484_v12  ;;  %v2569_v12 = vld [vmem:[#allocation5 + $0x388] ss:$16 sps:$4 sm:$0xff]   ;;  %v2574_v14 = vld [vmem:[#allocation5 + $0x5ac] ss:$16 sps:$4 sm:$0xff]  }
  0xaa   :  { %1435 = vmatpush2.bf16.msra.mxu0 %v2485_v16  ;;  %v2572_v16 = vld [vmem:[#allocation5 + $0x5a8] ss:$16 sps:$4 sm:$0xff]  }
  0xab   :  { %1513 = vmatpush2.bf16.msra.mxu1 %v2482_v15  ;;  %1436 = vmatprep.subr.bf16.mxu0 %v2493_v18  ;;  %v2577_v15 = vld [vmem:[#allocation5 + $0x36c] ss:$16 sps:$4 sm:$0xff]  }
  0xac   :  { %1514 = vmatprep.subr.bf16.mxu1 %v2490_v17  ;;  %v2575_v17 = vld [vmem:[#allocation5 + $0x368] ss:$16 sps:$4 sm:$0xff]   ;;  %v2580_v18 = vld [vmem:[#allocation5 + $0x58c] ss:$16 sps:$4 sm:$0xff]  }
  0xae   :  { %1437 = vmatpush2.bf16.msra.mxu0 %v2491_v22  ;;  %v2578_v22 = vld [vmem:[#allocation5 + $0x588] ss:$16 sps:$4 sm:$0xff]  }
  0xaf   :  { %1515 = vmatpush2.bf16.msra.mxu1 %v2488_v21  ;;  %1438 = vmatprep.subr.bf16.mxu0 %v2499_v24  ;;  %v2583_v21 = vld [vmem:[#allocation5 + $0x34c] ss:$16 sps:$4 sm:$0xff]  }
  0xb0   :  { %1516 = vmatprep.subr.bf16.mxu1 %v2496_v23  ;;  %v2581_v23 = vld [vmem:[#allocation5 + $0x348] ss:$16 sps:$4 sm:$0xff]   ;;  %v2586_v24 = vld [vmem:[#allocation5 + $0x56c] ss:$16 sps:$4 sm:$0xff]  }
  0xb2   :  { %1439 = vmatpush2.bf16.msra.mxu0 %v2497_v27  ;;  %v2584_v27 = vld [vmem:[#allocation5 + $0x568] ss:$16 sps:$4 sm:$0xff]  }
  0xb3   :  { %1517 = vmatpush2.bf16.msra.mxu1 %v2494_v25  ;;  %1531 = vmatprep.subr.bf16.mxu0 %v2505_v30  ;;  %v2589_v25 = vld [vmem:[#allocation5 + $0x32c] ss:$16 sps:$4 sm:$0xff]  }
  0xb4   :  { %1518 = vmatprep.subr.bf16.mxu1 %v2502_v28  ;;  %v2587_v28 = vld [vmem:[#allocation5 + $0x328] ss:$16 sps:$4 sm:$0xff]   ;;  %v2592_v30 = vld [vmem:[#allocation5 + $0x54c] ss:$16 sps:$4 sm:$0xff]  }
  0xb5   :  { %1441 = vmatmul.mubr.bf16.vlgmr.msra.gmra.mxu0 %v2834_v32 }
  0xb6   :  { %1532 = vmatpush1.bf16.msra.mxu0 %v2503_v34  ;;  %1563 = vmatprep.mubr.bf16.mxu0 %v2807_v3  ;;  %v2532_v3 = vld [vmem:[#allocation5 + $0x48c] ss:$16 sps:$4 sm:$0xff]   ;;  %v2590_v34 = vld [vmem:[#allocation5 + $0x548] ss:$16 sps:$4 sm:$0xff]  }
  0xb7   :  { %1519 = vmatpush2.bf16.msra.mxu1 %v2500_v33  ;;  %1533 = vmatprep.subr.bf16.mxu0 %v2511_v36  ;;  %v2595_v33 = vld [vmem:[#allocation5 + $0x30c] ss:$16 sps:$4 sm:$0xff]  }
  0xb8   :  { %1520 = vmatprep.subr.bf16.mxu1 %v2508_v35  ;;  %v2593_v35 = vld [vmem:[#allocation5 + $0x308] ss:$16 sps:$4 sm:$0xff]   ;;  %v2598_v36 = vld [vmem:[#allocation5 + $0x52c] ss:$16 sps:$4 sm:$0xff]  }
  0xba   :  { %1534 = vmatpush1.bf16.msra.mxu0 %v2509_v38  ;;  %v2596_v38 = vld [vmem:[#allocation5 + $0x528] ss:$16 sps:$4 sm:$0xff]  }
  0xbb   :  { %1521 = vmatpush2.bf16.msra.mxu1 %v2506_v37  ;;  %1535 = vmatprep.subr.bf16.mxu0 %v2517_v40  ;;  %v2601_v37 = vld [vmem:[#allocation5 + $0x60c] ss:$16 sps:$4 sm:$0xff]  }
  0xbc   :  { %1572 = vmatprep.subr.bf16.mxu1 %v2514_v39  ;;  %v2599_v39 = vld [vmem:[#allocation5 + $0x608] ss:$16 sps:$4 sm:$0xff]   ;;  %v2604_v40 = vld [vmem:[#allocation5 + $0x50c] ss:$16 sps:$4 sm:$0xff]  }
  0xbe   :  { %1523 = vmatmul.mubr.bf16.vlgmr.msra.gmra.mxu1 %v2816_v19  ;;  %1536 = vmatpush1.bf16.msra.mxu0 %v2515_v41  ;;  %v2541_v19 = vld [vmem:[#allocation5 + $0x22c] ss:$16 sps:$4 sm:$0xff]   ;;  %v2602_v41 = vld [vmem:[#allocation5 + $0x508] ss:$16 sps:$4 sm:$0xff]  }
  0xbf   :  { %1573 = vmatpush1.bf16.msra.mxu1 %v2512_v13  ;;  %1537 = vmatprep.subr.bf16.mxu0 %v2523_v44  ;;  %v2605_v13 = vld [vmem:[#allocation8 + $0x78] sm:$0xff]   ;;  %v2607_v44 = vld [vmem:[#allocation8 + $0x70] sm:$0xff]  }
  0xc0   :  { %1574 = vmatprep.subr.bf16.mxu1 %v2520_v42  ;;  %1604 = vmatprep.mubr.bf16.mxu1 %v2820_v26  ;;  %v2542_v26 = vld [vmem:[#allocation5 + $0x448] ss:$16 sps:$4 sm:$0xff]   ;;  %v2606_v42 = vld [vmem:[#allocation8 + $0x38] sm:$0xff]  }
  0xc2   :  { %1538 = vmatpush1.bf16.msra.mxu0 %v2521_v46  ;;  %v2609_v46 = vld [vmem:[#allocation8 + $0x68] sm:$0xff]  }
  0xc3   :  { %1575 = vmatpush1.bf16.msra.mxu1 %v2518_v45  ;;  %1539 = vmatprep.subr.bf16.mxu0 %v2529_v48  ;;  %v2608_v45 = vld [vmem:[#allocation8 + $0x30] sm:$0xff]   ;;  %v2621_v48 = vld [vmem:[#allocation8 + $0xf8] sm:$0xff]  }
  0xc4   :  { %1576 = vmatprep.subr.bf16.mxu1 %v2526_v47  ;;  %v2611_v47 = vld [vmem:[#allocation8 + $0x60] sm:$0xff]  }
  0xc6   :  { %1540 = vmatpush1.bf16.msra.mxu0 %v2527_v50  ;;  %v2612_v50 = vld [vmem:[#allocation8 + $0x20] sm:$0xff]  }
  0xc7   :  { %1577 = vmatpush1.bf16.msra.mxu1 %v2524_v49  ;;  %1541 = vmatprep.subr.bf16.mxu0 %v2535_v51  ;;  %v2622_v49 = vld [vmem:[#allocation8 + $0xb8] sm:$0xff]  }
  0xc8   :  { %1578 = vmatprep.subr.bf16.mxu1 %v2532_v3  ;;  %v2624_v3 = vld [vmem:[#allocation8 + $0xb0] sm:$0xff]   ;;  %v2614_v51 = vld [vmem:[#allocation8 + $0x18] sm:$0xff]  }
  0xca   :  { %1542 = vmatpush1.bf16.msra.mxu0 %v2533_v53  ;;  %v2615_v53 = vld [vmem:[#allocation8 + $0x50] sm:$0xff]  }
  0xcb   :  { %1579 = vmatpush1.bf16.msra.mxu1 %v2530_v52  ;;  %1543 = vmatprep.subr.bf16.mxu0 %v2541_v19  ;;  %v2626_v52 = vld [vmem:[#allocation8 + $0xa8] sm:$0xff]   ;;  %v2616_v19 = vld [vmem:[#allocation8 + $0x10] sm:$0xff]  }
  0xcc   :  { %1580 = vmatprep.subr.bf16.mxu1 %v2538_v54  ;;  %v2627_v54 = vld [vmem:[#allocation8 + $0xe0] sm:$0xff]  }
  0xce   :  { %1544 = vmatpush1.bf16.msra.mxu0 %v2539_v56  ;;  %v2618_v56 = vld [vmem:[#allocation8 + $0x8] sm:$0xff]  }
  0xcf   :  { %1581 = vmatpush1.bf16.msra.mxu1 %v2536_v55  ;;  %1545 = vmatprep.subr.bf16.mxu0 %v2547_v58  ;;  %v2617_v55 = vld [vmem:[#allocation8 + $0x48] sm:$0xff]   ;;  %v2620_v58 = vld [vmem:[#allocation8] sm:$0xff]  }
  0xd0   :  { %1582 = vmatprep.subr.bf16.mxu1 %v2544_v57  ;;  %v2619_v57 = vld [vmem:[#allocation8 + $0x40] sm:$0xff]  }
  0xd2   :  { %1546 = vmatpush1.bf16.msra.mxu0 %v2545_v59 }
  0xd3   :  { %1583 = vmatpush1.bf16.msra.mxu1 %v2542_v26  ;;  %1547 = vmatprep.subr.bf16.mxu0 %v2553_v61  ;;  %v2628_v26 = vld [vmem:[#allocation8 + $0xa0] sm:$0xff]  }
  0xd4   :  { %1584 = vmatprep.subr.bf16.mxu1 %v2550_v60 }
  0xd6   :  { %1548 = vmatpush2.bf16.msra.mxu0 %v2551_v63  ;;  %v2629_v63 = vld [vmem:[#allocation8 + $0xd8] sm:$0xff]  }
  0xd7   :  { %1585 = vmatpush1.bf16.msra.mxu1 %v2548_v62  ;;  %1549 = vmatprep.subr.bf16.mxu0 %v2559_v1 }
  0xd8   :  { %1586 = vmatprep.subr.bf16.mxu1 %v2556_v0  ;;  %v2630_v0 = vld [vmem:[#allocation8 + $0x98] sm:$0xff]  }
  0xda   :  { %1550 = vmatpush2.bf16.msra.mxu0 %v2557_v4 }
  0xdb   :  { %1587 = vmatpush1.bf16.msra.mxu1 %v2554_v2  ;;  %1551 = vmatprep.subr.bf16.mxu0 %v2565_v6  ;;  %v2631_v6 = vld [vmem:[#allocation8 + $0xd0] sm:$0xff]  }
  0xdc   :  { %1588 = vmatprep.subr.bf16.mxu1 %v2562_v5 }
  0xde   :  { %1552 = vmatpush2.bf16.msra.mxu0 %v2563_v8 }
  0xdf   :  { %1589 = vmatpush2.bf16.msra.mxu1 %v2560_v7  ;;  %1553 = vmatprep.subr.bf16.mxu0 %v2571_v10  ;;  %v2632_v7 = vld [vmem:[#allocation8 + $0x90] sm:$0xff]   ;;  %v2633_v10 = vld [vmem:[#allocation8 + $0xc8] sm:$0xff]  }
  0xe0   :  { %1590 = vmatprep.subr.bf16.mxu1 %v2568_v9 }
  0xe2   :  { %1554 = vmatpush2.bf16.msra.mxu0 %v2569_v12 }
  0xe3   :  { %1591 = vmatpush2.bf16.msra.mxu1 %v2566_v11  ;;  %1555 = vmatprep.subr.bf16.mxu0 %v2577_v15  ;;  %v2634_v11 = vld [vmem:[#allocation8 + $0x88] sm:$0xff]   ;;  %v2635_v15 = vld [vmem:[#allocation8 + $0xc0] sm:$0xff]  }
  0xe4   :  { %1592 = vmatprep.subr.bf16.mxu1 %v2574_v14 }
  0xe6   :  { %1556 = vmatpush2.bf16.msra.mxu0 %v2575_v17  ;;  %v324_v17 = vsub.s32 0, %v2798_v43 }
  0xe7   :  { %1593 = vmatpush2.bf16.msra.mxu1 %v2572_v16  ;;  %1557 = vmatprep.subr.bf16.mxu0 %v2583_v21  ;;  %v2636_v16 = vld [vmem:[#allocation8 + $0x80] sm:$0xff]   ;;  %v328_v21 = vsub.s32 1, %v2798_v43 }
  0xe8   :  { %1594 = vmatprep.subr.bf16.mxu1 %v2580_v18  ;;  %v320_v18 = vld [vmem:[#allocation7] sm:$0xf] }
  0xea   :  { %1558 = vmatpush2.bf16.msra.mxu0 %v2581_v23  ;;  %v329_v23 = vrot.slane %v320_v18, %v328_v21 }
  0xeb   :  { %1595 = vmatpush2.bf16.msra.mxu1 %v2578_v22  ;;  %1559 = vmatprep.subr.bf16.mxu0 %v2589_v25  ;;  %v325_v22 = vrot.slane %v320_v18, %v324_v17 }
  0xec   :  { %1596 = vmatprep.subr.bf16.mxu1 %v2586_v24 }
  0xee   :  { %1560 = vmatpush2.bf16.msra.mxu0 %v2587_v28 }
  0xef   :  { %1597 = vmatpush2.bf16.msra.mxu1 %v2584_v27  ;;  %1561 = vmatprep.subr.bf16.mxu0 %v2595_v33 }
  0xf0   :  { %1598 = vmatprep.subr.bf16.mxu1 %v2592_v30 }
  0xf2   :  { %1562 = vmatpush2.bf16.msra.mxu0 %v2593_v35 }
  0xf3   :  { %1599 = vmatpush2.bf16.msra.mxu1 %v2590_v34  ;;  %1627 = vmatprep.subr.bf16.mxu0 %v2601_v37 }
  0xf4   :  { %1600 = vmatprep.subr.bf16.mxu1 %v2598_v36 }
  0xf5   :  { %1564 = vmatmul.mubr.bf16.vlgmr.msra.gmra.mxu0 %v2818_v20  ;;  %v2610_v20 = vld [vmem:[#allocation8 + $0x28] sm:$0xff]  }
  0xf6   :  { %1628 = vmatpush1.bf16.msra.mxu0 %v2599_v39  ;;  %1645 = vmatprep.mubr.bf16.mxu0 %v2754_v29  ;;  %v2623_v29 = vld [vmem:[#allocation8 + $0xf0] sm:$0xff]  }
  0xf7   :  { %1601 = vmatpush2.bf16.msra.mxu1 %v2596_v38  ;;  %2254 = vmatprep.subr.bf16.mxu0 %v2605_v13 }
  0xf8   :  { %1602 = vmatprep.subr.bf16.mxu1 %v2604_v40 }
  0xfb   :  { %1603 = vmatpush2.bf16.msra.mxu1 %v2602_v41 }
  0xfc   :  { %2276 = vmatprep.subr.bf16.mxu1 %v2621_v48  ;;  %v336_v48 = vsub.s32 3, %v2798_v43 }
  0xfd   :  { %2220 = vmatmul.mubr.msk.bf16.vlgmr.msra.gmra.mxu0 %vm1322_vm0, %v2827_v31  ;;  %v2625_v31 = vld [vmem:[#allocation8 + $0xe8] sm:$0xff]  }
  0xfe   :  { %1605 = vmatmul.mubr.bf16.vlgmr.msra.gmra.mxu1 %v2834_v32  ;;  %2255 = vmatpush3.bf16.msra.mxu0 %v2606_v42  ;;  %v2613_v32 = vld [vmem:[#allocation8 + $0x58] sm:$0xff]  }
  0xff   :  { %2256 = vmatprep.subr.bf16.mxu0 %v2607_v44  ;;  %2277 = vmatpush3.bf16.msra.mxu1 %v2622_v49 }
 0x100   :  { %2278 = vmatprep.subr.bf16.mxu1 %v2623_v29 }
 0x102   :  { %2257 = vmatpush3.bf16.msra.mxu0 %v2608_v45 }
 0x103   :  { %2258 = vmatprep.subr.bf16.mxu0 %v2609_v46  ;;  %2279 = vmatpush3.bf16.msra.mxu1 %v2624_v3  ;;  %v337_v3 = vrot.slane %v320_v18, %v336_v48 }
 0x104   :  { %2280 = vmatprep.subr.bf16.mxu1 %v2625_v31 }
 0x106   :  { %2259 = vmatpush3.bf16.msra.mxu0 %v2610_v20 }
 0x107   :  { %2260 = vmatprep.subr.bf16.mxu0 %v2611_v47  ;;  %2281 = vmatpush3.bf16.msra.mxu1 %v2626_v52  ;;  %v332_v47 = vsub.s32 2, %v2798_v43 }
 0x108   :  { %2282 = vmatprep.subr.bf16.mxu1 %v2627_v54 }
 0x109   :  { %v333_v29 = vrot.slane %v320_v18, %v332_v47 }
 0x10a   :  { %2261 = vmatpush3.bf16.msra.mxu0 %v2612_v50 }
 0x10b   :  { %2262 = vmatprep.subr.bf16.mxu0 %v2613_v32  ;;  %2283 = vmatpush3.bf16.msra.mxu1 %v2628_v26 }
 0x10c   :  { %2284 = vmatprep.subr.bf16.mxu1 %v2629_v63 }
 0x10e   :  { %2263 = vmatpush3.bf16.msra.mxu0 %v2614_v51 }
 0x10f   :  { %2264 = vmatprep.subr.bf16.mxu0 %v2615_v53  ;;  %2285 = vmatpush3.bf16.msra.mxu1 %v2630_v0 }
 0x110   :  { %2286 = vmatprep.subr.bf16.mxu1 %v2631_v6 }
 0x112   :  { %2265 = vmatpush3.bf16.msra.mxu0 %v2616_v19 }
 0x113   :  { %2266 = vmatprep.subr.bf16.mxu0 %v2617_v55  ;;  %2287 = vmatpush3.bf16.msra.mxu1 %v2632_v7 }
 0x114   :  { %2288 = vmatprep.subr.bf16.mxu1 %v2633_v10  ;;  %v2221_v10 = vld [vmem:[%s2859_s4] ss:$0 sm:$0xff] }
 0x116   :  { %2267 = vmatpush3.bf16.msra.mxu0 %v2618_v56 }
 0x117   :  { %2268 = vmatprep.subr.bf16.mxu0 %v2619_v57  ;;  %2289 = vmatpush3.bf16.msra.mxu1 %v2634_v11 }
 0x118   :  { %2290 = vmatprep.subr.bf16.mxu1 %v2635_v15 }
 0x11a   :  { %2269 = vmatpush3.bf16.msra.mxu0 %v2620_v58 }
 0x11b   :  { %2291 = vmatpush3.bf16.msra.mxu1 %v2636_v16 }
 0x135   :  { %v1360_v59 = vpop.f32.mrf.mxu0 }
 0x136   :  { %v1401_v60 = vpop.f32.mrf.mxu1  ;;  %v1361_v24 = vadd.f32 %v1360_v59, %v325_v22 }
 0x137   :  { %v1362_v61 = vpop.f32.mrf.mxu0 }
 0x138   :  { %v1403_v62 = vpop.f32.mrf.mxu1  ;;  %v1363_v25 = vadd.f32 %v1362_v61, %v329_v23  ;;  %v1402_v27 = vadd.f32 %v1401_v60, %v1361_v24 }
 0x139   :  { %v1364_v1 = vpop.f32.mrf.mxu0 }
 0x13a   :  { %v1405_v2 = vpop.f32.mrf.mxu1  ;;  %v1404_v30 = vadd.f32 %v1403_v62, %v1363_v25 }
 0x13b   :  { %v1365_v4 = vpop.f32.mrf.mxu0 }
 0x13c   :  { %v1406_v5 = vpop.f32.mrf.mxu1 }
 0x13e   :  { %v1483_v8 = vpop.f32.mrf.mxu1 }
 0x140   :  { %v1485_v9 = vpop.f32.mrf.mxu1 }
 0x142   :  { %v1487_v12 = vpop.f32.mrf.mxu1 }
 0x144   :  { %v1488_v14 = vpop.f32.mrf.mxu1 }
 0x175   :  { %v1442_v28 = vpop.f32.mrf.mxu0 }
 0x176   :  { %v1443_v33 = vadd.f32 %v1442_v28, %v1402_v27 }
 0x177   :  { %v1444_v34 = vpop.f32.mrf.mxu0 }
 0x178   :  { %v1484_v35 = vadd.f32 %v1483_v8, %v1443_v33  ;;  %v1445_v36 = vadd.f32 %v1444_v34, %v1404_v30 }
 0x179   :  { %v1446_v37 = vpop.f32.mrf.mxu0 }
 0x17a   :  { %v1486_v38 = vadd.f32 %v1485_v9, %v1445_v36  ;;  %v1654_v39 = vmax.f32 %v1484_v35, 0.0 }
 0x17b   :  { %v1447_v40 = vpop.f32.mrf.mxu0 }
 0x17c   :  { %v1655_v13 = vmax.f32 %v1486_v38, 0.0  ;;  %v1658_v44 = vpack.c.bf16 %v1654_v39, %v1654_v39 }
 0x17e   :  { %v1524_v41 = vpop.f32.mrf.mxu1  ;;  %v1659_v42 = vpack.c.bf16 %v1655_v13, %v1655_v13 }
 0x17f   :  { %v1525_v31 = vadd.f32 %v1524_v41, %v333_v29 }
 0x180   :  { %v1526_v45 = vpop.f32.mrf.mxu1  ;;  %1957 = vmatprep.mubr.bf16.mxu0 %v1659_v42 }
 0x181   :  { %1958 = vmatmul.mubr.bf16.vlgmr.msra.gmra.mxu0 %v1658_v44  ;;  %v1527_v52 = vadd.f32 %v1526_v45, %v337_v3 }
 0x182   :  { %v1528_v46 = vpop.f32.mrf.mxu1 }
 0x184   :  { %v1529_v20 = vpop.f32.mrf.mxu1 }
 0x1b5   :  { %v1565_v49 = vpop.f32.mrf.mxu0 }
 0x1b6   :  { %v1566_v53 = vadd.f32 %v1565_v49, %v1525_v31 }
 0x1b7   :  { %v1567_v50 = vpop.f32.mrf.mxu0 }
 0x1b8   :  { %v1568_v55 = vadd.f32 %v1567_v50, %v1527_v52 }
 0x1b9   :  { %v1569_v32 = vpop.f32.mrf.mxu0 }
 0x1bb   :  { %v1570_v51 = vpop.f32.mrf.mxu0 }
 0x1bd   :  { %v1647_v19 = vpop.f32.mrf.mxu0 }
 0x1be   :  { %v1606_v54 = vpop.f32.mrf.mxu1 }
 0x1bf   :  { %v1607_v56 = vadd.f32 %v1606_v54, %v1566_v53  ;;  %v1649_v58 = vpop.f32.mrf.mxu0 }
 0x1c0   :  { %v1608_v57 = vpop.f32.mrf.mxu1 }
 0x1c1   :  { %v1648_v26 = vadd.f32 %v1647_v19, %v1607_v56  ;;  %v1609_v59 = vadd.f32 %v1608_v57, %v1568_v55  ;;  %v1651_v61 = vpop.f32.mrf.mxu0 }
 0x1c2   :  { %v1610_v60 = vpop.f32.mrf.mxu1 }
 0x1c3   :  { %v1650_v43 = vadd.f32 %v1649_v58, %v1609_v59  ;;  %v1656_v62 = vmax.f32 %v1648_v26, 0.0  ;;  %v1652_v0 = vpop.f32.mrf.mxu0 }
 0x1c4   :  { %v1611_v63 = vpop.f32.mrf.mxu1 }
 0x1c5   :  { %v1657_v1 = vmax.f32 %v1650_v43, 0.0  ;;  %v1660_v4 = vpack.c.bf16 %v1656_v62, %v1656_v62 }
 0x1c7   :  { %v1661_v2 = vpack.c.bf16 %v1657_v1, %v1657_v1 }
 0x1c9   :  { %1997 = vmatprep.mubr.bf16.mxu1 %v1661_v2 }
 0x1ca   :  { %1998 = vmatmul.mubr.bf16.vlgmr.msra.gmra.mxu1 %v1660_v4 }
 0x241   :  { %v2270_v5 = vpop.f32.mrf.mxu0 }
 0x243   :  { %v2271_v6 = vpop.f32.mrf.mxu0 }
 0x244   :  { %v2272_v7 = vadd.f32 %v2271_v6, %v2270_v5 }
 0x245   :  { %v2273_v8 = vpop.f32.mrf.mxu0 }
 0x246   :  { %v1960_v14 = vadd.f32 %v2272_v7, %v2221_v10 }
 0x247   :  { %v2274_v9 = vpop.f32.mrf.mxu0 }
 0x28a   :  { %v2292_v11 = vpop.f32.mrf.mxu1 }
 0x28c   :  { %v2293_v12 = vpop.f32.mrf.mxu1 }
 0x28d   :  { %v2294_v15 = vadd.f32 %v2293_v12, %v2292_v11 }
 0x28e   :  { %v2295_v16 = vpop.f32.mrf.mxu1 }
 0x28f   :  { %v2000_v17 = vadd.f32 %v2294_v15, %v1960_v14 }
 0x290   :  { %v2296_v18 = vpop.f32.mrf.mxu1 }
 0x291   :  { %2005 = vst [vmem:[#allocation10] sm:$0x3] %v2000_v17 }
 0x292   :  { %2728 = shalt.err (!%p2725_p10)
}
 0x293   :  { %2015 = dma.vmem_to_hbm [thread:$0]  %s2013_s16, 32, %s2860_s5, [#allocation4]  }
 0x294   :  { %2743 = dma.done.wait [#allocation4], 32  }
 0x295   :  { %2744 = vsyncadd [#allocation4], 4294967264 }
 0x296   :  { %2019 = vsyncpa [#allocation3], 1 }
 0x297   :  { %2020 = vsyncpa [#allocation6], 1 }
 0x298   :  { %2021 = vsyncpa [#allocation9], 1 }
 0x299   :  { %2022 = vsyncpa [#allocation4], 1 }

</bundles_post_ra>
